<compile_context>
chip_gen: v7x
topology: tpu7x:2x2x1
jax: 0.10.0
libtpu: 0.0.40
codegen_flags: <defaults>
</compile_context>

<pallas_src>
import functools
import math

import jax
import jax.numpy as jnp
from jax import lax
from jax.experimental import pallas as pl
from jax.experimental.pallas import tpu as pltpu

_LANES = 128
_ACC_ROWS = 8                       # accumulator is one f32 vreg: (8, 128)
_MAX_BLOCK_ROWS = 2048              # 2048 x 128 f32 = 1 MiB / stream / step
_N_CORES = 2                        # leading "parallel" grid axis (v7x megacore)
_VMEM_LIMIT_BYTES = 32 * 1024 * 1024  # safe on v5e (16 MiB default) .. v7x (64 MiB phys)


def _round_up(x, m):
    return (x + m - 1) // m * m


def _cdiv(a, b):
    return -(-a // b)


def _hdr_loss_kernel(x_ref, t_ref, out_ref, *, eps, steps, block_rows,
                     valid_rows):
    c = pl.program_id(0)
    k = pl.program_id(1)

    @pl.when(k == 0)
    def _init():
        out_ref[...] = jnp.zeros_like(out_ref)

    # Interleaved (re, im) data, (block_rows, 128).  Upcast in-kernel so bf16
    # inputs stream at half the HBM bytes.
    x = x_ref[...].astype(jnp.float32)
    t = t_ref[...].astype(jnp.float32)

    err = x - t
    err2 = err * err
    x2 = x * x

    # Pair-sum adjacent lanes with a single-lane roll (XLU slot).  Pairs never
    # straddle a row boundary: rows are 128 (even) lanes wide and each row
    # starts at an even flat offset.
    shift = _LANES - 1  # == -1 mod 128
    err_pair = err2 + pltpu.roll(err2, shift=shift, axis=1)
    x_pair = x2 + pltpu.roll(x2, shift=shift, axis=1)

    # Pair mask depends only on the lane index: build it once per step from a
    # tiny (1, 128) rolled iota (robust to the roll direction convention) and
    # let the final jnp.where broadcast it.
    lane = lax.broadcasted_iota(jnp.int32, (1, _LANES), 1)
    lane_nbr = pltpu.roll(lane, shift=shift, axis=1)
    pair_mask = lane_nbr == jnp.bitwise_xor(lane, 1)           # (1, 128)

    # Row-validity mask: zero rows past the end of the array (partial trailing
    # block / clamped out-of-range block).  Replaces the old wrapper-side
    # jnp.pad-to-block-granularity full-array copy.
    row_start = (c * steps + k) * block_rows
    row_id = lax.broadcasted_iota(jnp.int32, (block_rows, 1), 0)
    row_ok = (row_start + row_id) < valid_rows                 # (block_rows, 1)

    denom = jnp.sqrt(x_pair) + jnp.float32(eps)
    # Approximate reciprocal runs on the EUP (an idle slot in this kernel)
    # instead of an exact VALU divide; ~1e-4 relative error on the loss.
    inv_d2 = pl.reciprocal(denom * denom, approx=True)
    loss = jnp.where(jnp.logical_and(pair_mask, row_ok),
                     err_pair * inv_d2, 0.0)

    # (block_rows, 128) -> (block_rows // 8, 8, 128) -> VPU tree-sum directly
    # into the VMEM-resident output block (block index constant across k).
    out_ref[...] += jnp.sum(loss.reshape(-1, _ACC_ROWS, _LANES), axis=0,
                            keepdims=True)


def hdr_loss(inp, target, weights=None, reduce=True, eps=1e-3):
    """HDRLoss.forward(input, target, weights=None, reduce=True) -> scalar f32.

    `inp` / `target`: real float arrays of shape (..., 2) holding (re, im)
    pairs, exactly as torch.view_as_complex expects.
    """
    if weights is not None:
        # TODO(synk): weights path (loss * weights.unsqueeze(-1)) not implemented.
        raise NotImplementedError("hdr_loss: weights != None is not supported")
    del reduce  # The PyTorch module always returns loss.mean().
    assert inp.shape == target.shape and inp.shape[-1] == 2

    total = math.prod(inp.shape)
    n_valid = total // 2  # number of complex elements -> mean denominator
    if n_valid == 0:
        raise ValueError("hdr_loss: empty input")

    xf = inp.reshape(-1)
    tf = target.reshape(-1)

    # Lane-dense (rows, 128) view.  Only pad (a full-array copy) when the
    # element count is not a multiple of 8*128; zero padding contributes
    # exactly 0 loss.  Typical shapes take the copy-free plain-reshape path,
    # and tail blocks beyond `rows` are masked in-kernel, so no
    # block-granularity padding is ever needed.
    quantum = _ACC_ROWS * _LANES
    padded_total = _round_up(total, quantum)
    if padded_total != total:
        pad = padded_total - total
        xf = jnp.pad(xf, (0, pad))
        tf = jnp.pad(tf, (0, pad))
    rows = padded_total // _LANES
    # NOTE: for contiguous row-major inputs these reshapes are metadata-only;
    # if XLA ever inserts a relayout copy here, feed the original-shaped
    # arrays and express the (rows, 128) view via the BlockSpec instead.
    x2d = xf.reshape(rows, _LANES)
    t2d = tf.reshape(rows, _LANES)

    block_rows = min(_MAX_BLOCK_ROWS, rows)   # multiple of 8 by construction
    num_blocks = _cdiv(rows, block_rows)
    n_cores = min(_N_CORES, num_blocks)
    steps = _cdiv(num_blocks, n_cores)

    def in_index_map(c, k):
        # Clamp fully out-of-range blocks (at most n_cores-1 of them when
        # num_blocks is not a multiple of n_cores); the kernel masks all of
        # their rows to zero, so the re-read block contributes nothing.
        return (jnp.minimum(c * steps + k, num_blocks - 1), 0)

    in_spec = pl.BlockSpec((block_rows, _LANES), in_index_map)
    out_spec = pl.BlockSpec((1, _ACC_ROWS, _LANES), lambda c, k: (c, 0, 0))

    kernel = functools.partial(_hdr_loss_kernel, eps=float(eps), steps=steps,
                               block_rows=block_rows, valid_rows=rows)

    partials = pl.pallas_call(
        kernel,
        out_shape=jax.ShapeDtypeStruct((n_cores, _ACC_ROWS, _LANES),
                                       jnp.float32),
        grid_spec=pltpu.PrefetchScalarGridSpec(
            num_scalar_prefetch=0,
            grid=(n_cores, steps),
            in_specs=[in_spec, in_spec],
            out_specs=out_spec,
        ),
        compiler_params=pltpu.CompilerParams(
            dimension_semantics=("parallel", "arbitrary"),
            vmem_limit_bytes=_VMEM_LIMIT_BYTES),
    )(x2d, t2d)

    # Tiny final reduction (n_cores*8*128 values) + mean normalization.
    return jnp.sum(partials) / jnp.float32(n_valid)


def _hdr_loss_ref(inp, target, eps=1e-3):
    x = lax.complex(inp[..., 0], inp[..., 1]).astype(jnp.complex64)
    t = lax.complex(target[..., 0], target[..., 1]).astype(jnp.complex64)
    err = x - t
    loss = (jnp.abs(err) / (jnp.abs(x) + eps)) ** 2
    return jnp.mean(loss)


if __name__ == "__main__":
    key = jax.random.PRNGKey(0)
    eps = 1e-3

    def check(shape):
        k1, k2 = jax.random.split(jax.random.fold_in(key, math.prod(shape)))
        inp = jax.random.normal(k1, shape, dtype=jnp.float32)
        tgt = jax.random.normal(k2, shape, dtype=jnp.float32)
        out = jax.block_until_ready(hdr_loss(inp, tgt, eps=eps))
        ref = jax.block_until_ready(_hdr_loss_ref(inp, tgt, eps=eps))
        # rtol accounts for the EUP approximate-reciprocal path (~1e-4 rel);
        # use an exact divide in the kernel if bit-tight parity is required.
        assert jnp.allclose(out, ref, rtol=1e-3, atol=1e-6), (shape, out, ref)

    # Small "complex image" consistent with the module: batch=2, channels=4,
    # spatial 16x16, trailing dim of 2 holds (re, im).
    check((2, 4, 16, 16, 2))
    # Exercises in-kernel tail masking: 4104 rows of 128 lanes -> one partial
    # trailing block and one clamped out-of-range block on the 2-way axis.
    check((4104, 64, 2))
    # Exercises the (tiny) wrapper-side pad-to-1024-elements path.
    check((3, 5, 7, 2))

    print("KERNEL_OK")
</pallas_src>

<mosaic_0001>
module attributes {stable_mosaic.version = 11 : i64} {
  func.func @_hdr_loss_kernel(%arg0: i32, %arg1: i32, %arg2: memref<32x128xf32, #tpu.memory_space<vmem>>, %arg3: memref<32x128xf32, #tpu.memory_space<vmem>>, %arg4: memref<1x8x128xf32, #tpu.memory_space<vmem>>) attributes {dimension_semantics = [#tpu.dimension_semantics<parallel>, #tpu.dimension_semantics<arbitrary>], iteration_bounds = array<i64: 1, 1>, scalar_prefetch = 0 : i64, scratch_operands = 0 : i64, tpu.core_type = #tpu.core_type<tc>, window_params = [{transform_indices = @transform_0, window_bounds = array<i64: 32, 128>}, {transform_indices = @transform_1, window_bounds = array<i64: 32, 128>}, {transform_indices = @transform_2, window_bounds = array<i64: 1, 8, 128>}]} {
    %c0_i32 = arith.constant 0 : i32
    %0 = arith.cmpi eq, %arg1, %c0_i32 : i32
    %1 = arith.extui %0 : i1 to i32
    %c0_i32_0 = arith.constant 0 : i32
    %2 = arith.cmpi ne, %1, %c0_i32_0 : i32
    scf.if %2 {
      %cst_16 = arith.constant 0.000000e+00 : f32
      %42 = vector.broadcast %cst_16 : f32 to vector<1x8x128xf32>
      %c0_17 = arith.constant 0 : index
      %c0_18 = arith.constant 0 : index
      %c0_19 = arith.constant 0 : index
      %43 = vector.load %arg4[%c0_17, %c0_18, %c0_19] : memref<1x8x128xf32, #tpu.memory_space<vmem>>, vector<1x8x128xf32>
      tpu.vector_store %arg4[%c0_17, %c0_18, %c0_19], %42 {strides = array<i32>} : memref<1x8x128xf32, #tpu.memory_space<vmem>>, vector<1x8x128xf32>,
    } else {
    }
    %c0 = arith.constant 0 : index
    %c0_1 = arith.constant 0 : index
    %3 = vector.load %arg2[%c0, %c0_1] : memref<32x128xf32, #tpu.memory_space<vmem>>, vector<32x128xf32>
    %c0_2 = arith.constant 0 : index
    %c0_3 = arith.constant 0 : index
    %4 = vector.load %arg3[%c0_2, %c0_3] : memref<32x128xf32, #tpu.memory_space<vmem>>, vector<32x128xf32>
    %5 = arith.subf %3, %4 : vector<32x128xf32>
    %6 = arith.mulf %5, %5 : vector<32x128xf32>
    %7 = arith.mulf %3, %3 : vector<32x128xf32>
    %c127_i32 = arith.constant 127 : i32
    %8 = tpu.dynamic_rotate %6 by %c127_i32 dim 1 : vector<32x128xf32>, i32 -> vector<32x128xf32>
    %9 = arith.addf %6, %8 : vector<32x128xf32>
    %c127_i32_4 = arith.constant 127 : i32
    %10 = tpu.dynamic_rotate %7 by %c127_i32_4 dim 1 : vector<32x128xf32>, i32 -> vector<32x128xf32>
    %11 = arith.addf %7, %10 : vector<32x128xf32>
    %12 = tpu.iota {dimensions = array<i32: 1>} : vector<1x128xi32>
    %c127_i32_5 = arith.constant 127 : i32
    %13 = tpu.dynamic_rotate %12 by %c127_i32_5 dim 1 : vector<1x128xi32>, i32 -> vector<1x128xi32>
    %c1_i32 = arith.constant 1 : i32
    %14 = vector.broadcast %c1_i32 : i32 to vector<1x128xi32>
    %15 = arith.xori %12, %14 : vector<1x128xi32>
    %16 = arith.cmpi eq, %13, %15 : vector<1x128xi32>
    %c1_i32_6 = arith.constant 1 : i32
    %17 = arith.muli %arg0, %c1_i32_6 : i32
    %18 = arith.addi %17, %arg1 : i32
    %c32_i32 = arith.constant 32 : i32
    %19 = arith.muli %18, %c32_i32 : i32
    %20 = tpu.iota {dimensions = array<i32: 0>} : vector<32x1xi32>
    %21 = vector.broadcast %19 : i32 to vector<32x1xi32>
    %22 = arith.addi %21, %20 : vector<32x1xi32>
    %c32_i32_7 = arith.constant 32 : i32
    %23 = vector.broadcast %c32_i32_7 : i32 to vector<32x1xi32>
    %24 = arith.cmpi slt, %22, %23 : vector<32x1xi32>
    %25 = math.sqrt %11 : vector<32x128xf32>
    %cst = arith.constant 1.000000e-03 : f32
    %26 = vector.broadcast %cst : f32 to vector<32x128xf32>
    %27 = arith.addf %25, %26 : vector<32x128xf32>
    %28 = arith.mulf %27, %27 : vector<32x128xf32>
    %29 = tpu.reciprocal %28 {approx = true} : vector<32x128xf32> -> vector<32x128xf32>
    %30 = vector.broadcast %16 : vector<1x128xi1> to vector<32x128xi1>
    %31 = vector.broadcast %24 : vector<32x1xi1> to vector<32x128xi1>
    %32 = arith.andi %30, %31 : vector<32x128xi1>
    %33 = arith.mulf %9, %29 : vector<32x128xf32>
    %cst_8 = arith.constant 0.000000e+00 : f32
    %34 = vector.broadcast %cst_8 : f32 to vector<32x128xf32>
    %35 = arith.select %32, %33, %34 : vector<32x128xi1>, vector<32x128xf32>
    %c0_9 = arith.constant 0 : index
    %c0_10 = arith.constant 0 : index
    %c0_11 = arith.constant 0 : index
    %36 = vector.load %arg4[%c0_9, %c0_10, %c0_11] : memref<1x8x128xf32, #tpu.memory_space<vmem>>, vector<1x8x128xf32>
    %37 = vector.shape_cast %35 : vector<32x128xf32> to vector<4x8x128xf32>
    %cst_12 = arith.constant dense<0.000000e+00> : vector<8x128xf32>
    %38 = vector.multi_reduction <add>, %37, %cst_12 [0] : vector<4x8x128xf32> to vector<8x128xf32>
    %39 = vector.shape_cast %38 : vector<8x128xf32> to vector<1x8x128xf32>
    %40 = arith.addf %36, %39 : vector<1x8x128xf32>
    %c0_13 = arith.constant 0 : index
    %c0_14 = arith.constant 0 : index
    %c0_15 = arith.constant 0 : index
    %41 = vector.load %arg4[%c0_13, %c0_14, %c0_15] : memref<1x8x128xf32, #tpu.memory_space<vmem>>, vector<1x8x128xf32>
    tpu.vector_store %arg4[%c0_13, %c0_14, %c0_15], %40 {strides = array<i32>} : memref<1x8x128xf32, #tpu.memory_space<vmem>>, vector<1x8x128xf32>,
    return
  }
  func.func @transform_0(%arg0: i32, %arg1: i32) -> (i32, i32) {
    %c1_i32 = arith.constant 1 : i32
    %0 = arith.muli %arg0, %c1_i32 : i32
    %1 = arith.addi %0, %arg1 : i32
    %c0_i32 = arith.constant 0 : i32
    %2 = arith.minsi %1, %c0_i32 : i32
    %c0_i32_0 = arith.constant 0 : i32
    %c0_i32_1 = arith.constant 0 : i32
    return %2, %c0_i32_0 : i32, i32
  }
  func.func @transform_1(%arg0: i32, %arg1: i32) -> (i32, i32) {
    %c1_i32 = arith.constant 1 : i32
    %0 = arith.muli %arg0, %c1_i32 : i32
    %1 = arith.addi %0, %arg1 : i32
    %c0_i32 = arith.constant 0 : i32
    %2 = arith.minsi %1, %c0_i32 : i32
    %c0_i32_0 = arith.constant 0 : i32
    %c0_i32_1 = arith.constant 0 : i32
    return %2, %c0_i32_0 : i32, i32
  }
  func.func @transform_2(%arg0: i32, %arg1: i32) -> (i32, i32, i32) {
    %c0_i32 = arith.constant 0 : i32
    %c0_i32_0 = arith.constant 0 : i32
    %c0_i32_1 = arith.constant 0 : i32
    return %arg0, %c0_i32, %c0_i32_0 : i32, i32, i32
  }
}

</mosaic_0001>

<bundles_post_ra>
// kernel: tpu_custom_call.1
= control target key start
LH: loop header
LB: loop body
LE: loop exit
PB: predicated region body
PF: predicated region fallthrough
CT: control target
= control target key end

     0   :  { %7 = vsyncpa [#allocation3], 0  ;;  %s396_s0 = inlined_call_operand.hbm [shape: f32[32,128], index: 0, kind: input, shape index: {}]   ;;  %s397_s1 = inlined_call_operand.hbm [shape: f32[32,128], index: 1, kind: input, shape index: {}]   ;;  %s398_s2 = inlined_call_operand.hbm [shape: f32[1,8,128], index: 2, kind: output, shape index: {}]  }
   0x1   :  { %8 = vsyncpa [#allocation6], 0 }
   0x2   :  { %9 = vsyncpa [#allocation4], 0  ;;  %s319_s9 = smov [#allocation2]   ;;  %s247_s13 = scalar_lea.hbm %s396_s0, 512 }
   0x3   :  { %s21_s10 = sshll.u32 %s319_s9, 4  ;;  %p248_p0 = scmp.ne.s32.totalorder %s396_s0, %s247_s13  ;;  %s22_s10 = int_to_ptr.vmem [resolvable:$true] %s21_s10 }
   0x4   :  { %p251_p1 = scmp.lt.u32.totalorder %s247_s13, %s396_s0 }
   0x6   :  { %p253_p2 = pnand %p251_p1, %p248_p0 }
   0x8   :  { %256 = shalt.err (!%p253_p2)
}
   0x9   :  { %s257_s18 = scalar_lea.vmem %s22_s10, 512  ;;  %p262_p4 = scmp.lt.s32.totalorder %s22_s10, %s22_s10 }
   0xa   :  { %p258_p3 = scmp.ne.s32.totalorder %s22_s10, %s257_s18  ;;  %p263_p5 = scmp.lt.s32.totalorder %s257_s18, %s257_s18 }
   0xc   :  { %p264_p6 = por %p263_p5, %p262_p4 }
   0xe   :  { %p265_p7 = pnand %p264_p6, %p258_p3 }
  0x10   :  { %268 = shalt.err (!%p265_p7)
}
  0x11   :  { %s320_s19 = smov 128   ;;  %s321_s20 = smov 8  }
  0x12   :  { %27 = dma.hbm_to_vmem [thread:$0]  %s396_s0, 512, %s22_s10, [#allocation3], %s320_s19, %s320_s19, %s321_s20  }
  0x13   :  { %s322_s23 = smov [#allocation5]   ;;  %s269_s27 = scalar_lea.hbm %s397_s1, 512 }
  0x14   :  { %s39_s24 = sshll.u32 %s322_s23, 4  ;;  %p270_p8 = scmp.ne.s32.totalorder %s397_s1, %s269_s27  ;;  %s40_s24 = int_to_ptr.vmem [resolvable:$true] %s39_s24 }
  0x15   :  { %p273_p9 = scmp.lt.u32.totalorder %s269_s27, %s397_s1 }
  0x17   :  { %p275_p10 = pnand %p273_p9, %p270_p8 }
  0x19   :  { %278 = shalt.err (!%p275_p10)
}
  0x1a   :  { %s279_s4 = scalar_lea.vmem %s40_s24, 512  ;;  %p284_p12 = scmp.lt.s32.totalorder %s40_s24, %s40_s24 }
  0x1b   :  { %p280_p11 = scmp.ne.s32.totalorder %s40_s24, %s279_s4  ;;  %p285_p13 = scmp.lt.s32.totalorder %s279_s4, %s279_s4 }
  0x1d   :  { %p286_p0 = por %p285_p13, %p284_p12 }
  0x1f   :  { %p287_p1 = pnand %p286_p0, %p280_p11 }
  0x21   :  { %290 = shalt.err (!%p287_p1)
}
  0x22   :  { %45 = dma.hbm_to_vmem [thread:$0]  %s397_s1, 512, %s40_s24, [#allocation6], %s320_s19, %s320_s19, %s321_s20  }
  0x23   :  { %313 = dma.done.wait [#allocation3], 512  }
  0x24   :  { %314 = vsyncadd [#allocation3], 4294966784 }
  0x25   :  { %315 = dma.done.wait [#allocation6], 512  }
  0x26   :  { %316 = vsyncadd [#allocation6], 4294966784  ;;  %v67_v0 = vld [vmem:[#allocation2 + $0x10] sm:$0xff]  ;;  %v65_v1 = vld [vmem:[#allocation2] sm:$0xff]  ;;  %s323_s6 = smov 127   ;;  %v109_v10 = vlaneseq  ;;  %v324_v34 = vmov 0  }
  0x27   :  { %v83_v2 = vmul.f32 %v67_v0, %v67_v0  ;;  %v69_v3 = vld [vmem:[#allocation5] sm:$0xff]  ;;  %v81_v4 = vmul.f32 %v65_v1, %v65_v1  ;;  %v68_v5 = vld [vmem:[#allocation2 + $0x18] sm:$0xff]  ;;  %v66_v6 = vld [vmem:[#allocation2 + $0x8] sm:$0xff]  ;;  %s325_s1 = smov [#allocation7]  }
  0x28   :  { %v73_v7 = vsub.f32 %v65_v1, %v69_v3  ;;  %v84_v8 = vmul.f32 %v68_v5, %v68_v5  ;;  %v82_v9 = vmul.f32 %v66_v6, %v66_v6  ;;  %v71_v11 = vld [vmem:[#allocation5 + $0x10] sm:$0xff]  ;;  %v70_v12 = vld [vmem:[#allocation5 + $0x8] sm:$0xff]  ;;  %v110_v14 = vand.u32 127, %v109_v10  ;;  %v72_v17 = vld [vmem:[#allocation5 + $0x18] sm:$0xff]  ;;  %s209_s7 = sshll.u32 %s325_s1, 4  ;;  %s210_s7 = int_to_ptr.vmem [resolvable:$true] %s209_s7 }
  0x29   :  { %101 = vrot.lane.b32.xlu1 %v83_v2, %s323_s6  ;;  %97 = vrot.lane.b32.xlu0 %v81_v4, %s323_s6  ;;  %v75_v13 = vsub.f32 %v67_v0, %v71_v11  ;;  %v74_v16 = vsub.f32 %v66_v6, %v70_v12  ;;  %v76_v20 = vsub.f32 %v68_v5, %v72_v17  ;;  %v173_v26 = vshrl.u32 %v109_v10, 7  ;;  %s291_s8 = scalar_lea.vmem %s210_s7, 128  ;;  %p296_p3 = scmp.lt.s32.totalorder %s210_s7, %s210_s7 }
  0x2a   :  { %v365_v15 = vmul.f32 %v73_v7, %v73_v7  ;;  %v113_v31 = vxor.u32 1, %v110_v14  ;;  %p292_p2 = scmp.ne.s32.totalorder %s210_s7, %s291_s8  ;;  %p297_p4 = scmp.lt.s32.totalorder %s291_s8, %s291_s8 }
  0x2b   :  { %v368_v18 = vmul.f32 %v74_v16, %v74_v16  ;;  %v370_v19 = vmul.f32 %v75_v13, %v75_v13  ;;  %v374_v21 = vmul.f32 %v76_v20, %v76_v20  ;;  %v174_v32 = vsub.s32 0, %v173_v26 }
  0x2c   :  { %p298_p5 = por %p297_p4, %p296_p3 }
  0x2d   :  { %103 = vrot.lane.b32.xlu1 %v84_v8, %s323_s6  ;;  %99 = vrot.lane.b32.xlu0 %v82_v9, %s323_s6 }
  0x2e   :  { %p299_p6 = pnand %p298_p5, %p292_p2 }
  0x31   :  { %111 = vrot.lane.b32.xlu0 %v110_v14, %s323_s6  ;;  %85 = vrot.lane.b32.xlu1 %v365_v15, %s323_s6 }
  0x35   :  { %87 = vrot.lane.b32.xlu0 %v368_v18, %s323_s6  ;;  %89 = vrot.lane.b32.xlu1 %v370_v19, %s323_s6 }
  0x39   :  { %91 = vrot.lane.b32.xlu0 %v374_v21, %s323_s6 }
  0x9b   :  { %v102_v22 = vpop.permute.xlu1 %101  ;;  %v98_v23 = vpop.permute.xlu0 %97 }
  0x9c   :  { %v107_v24 = vadd.f32 %v102_v22, %v83_v2  ;;  %v105_v25 = vadd.f32 %v98_v23, %v81_v4 }
  0x9e   :  { %231 = vrsqrt.f32 %v107_v24  ;;  %vm147_vm1 = vcmp.eq.f32.partialorder %v107_v24, inf  ;;  %v150_v40 = vand.u32 2147483648, %v107_v24  ;;  %vm133_vm2 = vcmp.eq.f32.partialorder %v105_v25, inf }
  0x9f   :  { %233 = vrsqrt.f32 %v105_v25  ;;  %v104_v27 = vpop.permute.xlu1 %103  ;;  %v100_v28 = vpop.permute.xlu0 %99  ;;  %v136_v42 = vand.u32 2147483648, %v105_v25  ;;  %vm149_vm3 = vcmp.eq.f32.partialorder %v107_v24, 0.0  ;;  %vm135_vm4 = vcmp.eq.f32.partialorder %v105_v25, 0.0 }
  0xa0   :  { %v108_v29 = vadd.f32 %v104_v27, %v84_v8  ;;  %v106_v30 = vadd.f32 %v100_v28, %v82_v9 }
  0xa2   :  { %235 = vrsqrt.f32 %v108_v29  ;;  %vm154_vm5 = vcmp.eq.f32.partialorder %v108_v29, inf  ;;  %v157_v51 = vand.u32 2147483648, %v108_v29  ;;  %vm140_vm6 = vcmp.eq.f32.partialorder %v106_v30, inf }
  0xa3   :  { %237 = vrsqrt.f32 %v106_v30  ;;  %v112_v33 = vpop.permute.xlu0 %111  ;;  %v143_v54 = vand.u32 2147483648, %v106_v30  ;;  %vm142_vm7 = vcmp.eq.f32.partialorder %v106_v30, 0.0  ;;  %vm156_vm8 = vcmp.eq.f32.partialorder %v108_v29, 0.0  ;;  %v86_v0 = vpop.permute.xlu1 %85 }
  0xa4   :  { %vm114_vm0 = vcmp.eq.s32.totalorder %v112_v33, %v113_v31  ;;  %v93_v4 = vadd.f32 %v86_v0, %v365_v15 }
  0xa5   :  { %v171_v35 = vsel %vm114_vm0, 1, %v324_v34 }
  0xa6   :  { %v377_v36 = vrot.slane %v171_v35, %v174_v32 }
  0xa7   :  { %v88_v2 = vpop.permute.xlu0 %87  ;;  %v90_v3 = vpop.permute.xlu1 %89 }
  0xa8   :  { %v232_v37 = vpop.eup %231  ;;  %v94_v7 = vadd.f32 %v88_v2, %v368_v18  ;;  %v95_v8 = vadd.f32 %v90_v3, %v370_v19  ;;  %vm176_vm9 = vcmp.eq.s32.totalorder %v377_v36, 1 }
  0xa9   :  { %v234_v38 = vpop.eup %233  ;;  %v146_v39 = vmul.f32 %v232_v37, %v107_v24 }
  0xaa   :  { %v132_v41 = vmul.f32 %v234_v38, %v105_v25 }
  0xab   :  { %v148_v43 = vsel %vm147_vm1, %v107_v24, %v146_v39  ;;  %v92_v6 = vpop.permute.xlu0 %91 }
  0xac   :  { %v236_v44 = vpop.eup %235  ;;  %v134_v45 = vsel %vm133_vm2, %v105_v25, %v132_v41  ;;  %v151_v46 = vsel %vm149_vm3, %v150_v40, %v148_v43  ;;  %v96_v12 = vadd.f32 %v92_v6, %v374_v21 }
  0xad   :  { %v238_v47 = vpop.eup %237  ;;  %v153_v48 = vmul.f32 %v236_v44, %v108_v29  ;;  %v137_v49 = vsel %vm135_vm4, %v136_v42, %v134_v45  ;;  %v161_v50 = vadd.f32 0.001, %v151_v46 }
  0xae   :  { %v139_v52 = vmul.f32 %v238_v47, %v106_v30  ;;  %v159_v53 = vadd.f32 0.001, %v137_v49 }
  0xaf   :  { %v155_v55 = vsel %vm154_vm5, %v108_v29, %v153_v48  ;;  %v165_v58 = vmul.f32 %v161_v50, %v161_v50 }
  0xb0   :  { %v163_v56 = vmul.f32 %v159_v53, %v159_v53  ;;  %v141_v57 = vsel %vm140_vm6, %v106_v30, %v139_v52  ;;  %v158_v59 = vsel %vm156_vm8, %v157_v51, %v155_v55 }
  0xb1   :  { %v144_v60 = vsel %vm142_vm7, %v143_v54, %v141_v57  ;;  %v162_v61 = vadd.f32 0.001, %v158_v59 }
  0xb2   :  { %239 = vrcp.f32 %v163_v56  ;;  %v160_v62 = vadd.f32 0.001, %v144_v60 }
  0xb3   :  { %v166_v63 = vmul.f32 %v162_v61, %v162_v61  ;;  %241 = vrcp.f32 %v165_v58 }
  0xb4   :  { %v164_v1 = vmul.f32 %v160_v62, %v160_v62 }
  0xb5   :  { %243 = vrcp.f32 %v166_v63 }
  0xb6   :  { %245 = vrcp.f32 %v164_v1 }
  0xbc   :  { %v240_v5 = vpop.eup %239 }
  0xbd   :  { %v242_v9 = vpop.eup %241  ;;  %v189_v11 = vmul.f32 %v240_v5, %v93_v4 }
  0xbe   :  { %v191_v16 = vmul.f32 %v242_v9, %v95_v8 }
  0xbf   :  { %v244_v10 = vpop.eup %243  ;;  %v193_v17 = vsel %vm176_vm9, %v189_v11, 0.0 }
  0xc0   :  { %v246_v13 = vpop.eup %245  ;;  %v192_v22 = vmul.f32 %v244_v10, %v96_v12  ;;  %v195_v23 = vsel %vm176_vm9, %v191_v16, 0.0 }
  0xc1   :  { %v190_v14 = vmul.f32 %v246_v13, %v94_v7 }
  0xc2   :  { %v196_v25 = vsel %vm176_vm9, %v192_v22, 0.0 }
  0xc3   :  { %v194_v20 = vsel %vm176_vm9, %v190_v14, 0.0 }
  0xc4   :  { %v198_v15 = vadd.f32 %v194_v20, %v193_v17 }
  0xc6   :  { %v199_v24 = vadd.f32 %v198_v15, %v195_v23 }
  0xc8   :  { %v200_v18 = vadd.f32 %v199_v24, %v196_v25 }
  0xca   :  { %202 = vst [vmem:[#allocation7] sm:$0xff] %v200_v18 }
  0xcb   :  { %302 = shalt.err (!%p299_p6)
}
  0xcc   :  { %s303_s11 = scalar_lea.hbm %s398_s2, 128 }
  0xcd   :  { %p304_p7 = scmp.ne.s32.totalorder %s398_s2, %s303_s11  ;;  %p307_p8 = scmp.lt.u32.totalorder %s303_s11, %s398_s2 }
  0xcf   :  { %p309_p9 = pnand %p307_p8, %p304_p7 }
  0xd1   :  { %312 = shalt.err (!%p309_p9)
}
  0xd2   :  { %212 = dma.vmem_to_hbm [thread:$0]  %s210_s7, 128, %s398_s2, [#allocation4]  }
  0xd3   :  { %317 = dma.done.wait [#allocation4], 128  }
  0xd4   :  { %318 = vsyncadd [#allocation4], 4294967168 }
  0xd5   :  { %216 = vsyncpa [#allocation3], 1 }
  0xd6   :  { %217 = vsyncpa [#allocation6], 1 }
  0xd7   :  { %218 = vsyncpa [#allocation4], 1 }

</bundles_post_ra>
